<compile_context>
chip_gen: v5e
topology: v5e:2x2
jax: 0.10.0
libtpu: 0.0.40
codegen_flags: <defaults>
</compile_context>

<pallas_src>
import jax
import jax.numpy as jnp
from jax.experimental import pallas as pl
from jax.experimental.pallas import tpu as pltpu


def mlp_policy_kernel(x_ref, w1_ref, b1_ref, w2_ref, b2_ref, wo_ref, bo_ref, probs_ref):
    """Two tanh hidden layers + linear head + softmax over the (padded) action axis."""
    x = x_ref[...]  # bf16 [TB, ob_dim]

    # hidden layer 1: Linear + Tanh  (bf16 MXU inputs, f32 accumulation, f32 tanh)
    h = jnp.tanh(
        jnp.dot(x, w1_ref[...], preferred_element_type=jnp.float32) + b1_ref[...]
    )
    # hidden layer 2: Linear + Tanh
    h = jnp.tanh(
        jnp.dot(h.astype(jnp.bfloat16), w2_ref[...],
                preferred_element_type=jnp.float32) + b2_ref[...]
    )
    # output head: Linear (identity activation). Padded lanes carry a -1e9 bias so they
    # vanish under exp() below and do not contaminate the softmax denominator.
    logits = (
        jnp.dot(h.astype(jnp.bfloat16), wo_ref[...],
                preferred_element_type=jnp.float32) + bo_ref[...]
    )

    # nn.Softmax() over the action axis (max-subtracted, f32).
    m = jnp.max(logits, axis=-1, keepdims=True)
    e = jnp.exp(logits - m)
    denom = jnp.sum(e, axis=-1, keepdims=True)
    probs = e * pl.reciprocal(denom, approx=True)  # EUP reciprocal instead of VALU divide
    probs_ref[...] = probs.astype(probs_ref.dtype)


def pg_agent_forward(obs, params, *, block_batch=512):
    """Pallas wrapper: returns Categorical probabilities, shape [B, ac_dim]."""
    w1, b1, w2, b2, wo, bo = params
    B, ob_dim = obs.shape
    layer_size = w1.shape[1]
    ac_dim = wo.shape[1]

    # --- lane-dense padded output head (pad N_out up to a multiple of 128). ---
    n_pad = pl.cdiv(ac_dim, 128) * 128
    wo_p = jnp.zeros((layer_size, n_pad), jnp.float32).at[:, :ac_dim].set(wo)
    bo_p = jnp.full((1, n_pad), -1e9, jnp.float32).at[:, :ac_dim].set(bo)

    # --- bf16 inputs for the MXU; biases stay f32 (added post-accumulation). ---
    obs_bf = obs.astype(jnp.bfloat16)
    w1_bf = w1.astype(jnp.bfloat16)
    w2_bf = w2.astype(jnp.bfloat16)
    wo_bf = wo_p.astype(jnp.bfloat16)

    # --- batch tiling: big tiles, sublane-aligned, pad B up to a tile multiple. ---
    tb = min(block_batch, B)
    tb = ((tb + 7) // 8) * 8                      # sublane (8) alignment
    b_pad = pl.cdiv(B, tb) * tb
    if b_pad != B:
        obs_bf = jnp.pad(obs_bf, ((0, b_pad - B), (0, 0)))
    grid = (b_pad // tb,)

    def moving_spec(shape):
        return pl.BlockSpec(shape, lambda i: (i, 0))

    def resident_spec(shape):
        # constant block index -> weights/biases DMA'd once, held in VMEM across the grid
        return pl.BlockSpec(shape, lambda i: (0, 0))

    out = pl.pallas_call(
        mlp_policy_kernel,
        out_shape=jax.ShapeDtypeStruct((b_pad, n_pad), jnp.float32),
        grid_spec=pl.GridSpec(
            grid=grid,
            in_specs=[
                moving_spec((tb, ob_dim)),
                resident_spec(w1_bf.shape), resident_spec(b1.shape),
                resident_spec(w2_bf.shape), resident_spec(b2.shape),
                resident_spec(wo_bf.shape), resident_spec(bo_p.shape),
            ],
            out_specs=moving_spec((tb, n_pad)),
        ),
        compiler_params=pltpu.CompilerParams(
            dimension_semantics=("parallel",),     # shards batch tiles across TCs on v7x
        ),
    )(obs_bf, w1_bf, b1, w2_bf, b2, wo_bf, bo_p)

    return out[:B, :ac_dim]


def init_mlp_params(key, ob_dim, ac_dim, layer_size):
    """Deterministic init mimicking torch.nn.Linear: U(-1/sqrt(fan_in), 1/sqrt(fan_in))."""
    def linear(key, fan_in, fan_out):
        kw, kb = jax.random.split(key)
        bound = 1.0 / jnp.sqrt(float(fan_in))
        w = jax.random.uniform(kw, (fan_in, fan_out), jnp.float32, -bound, bound)
        b = jax.random.uniform(kb, (1, fan_out), jnp.float32, -bound, bound)
        return w, b

    k1, k2, k3 = jax.random.split(key, 3)
    w1, b1 = linear(k1, ob_dim, layer_size)
    w2, b2 = linear(k2, layer_size, layer_size)
    wo, bo = linear(k3, layer_size, ac_dim)
    return (w1, b1, w2, b2, wo, bo)


def ref_forward(obs, params):
    """Plain-JAX reference matching the kernel's numerics (bf16 MXU inputs, f32 accum)."""
    w1, b1, w2, b2, wo, bo = params
    x = obs.astype(jnp.bfloat16)
    h = jnp.tanh(jnp.dot(x, w1.astype(jnp.bfloat16),
                         preferred_element_type=jnp.float32) + b1)
    h = jnp.tanh(jnp.dot(h.astype(jnp.bfloat16), w2.astype(jnp.bfloat16),
                         preferred_element_type=jnp.float32) + b2)
    logits = jnp.dot(h.astype(jnp.bfloat16), wo.astype(jnp.bfloat16),
                     preferred_element_type=jnp.float32) + bo
    return jax.nn.softmax(logits, axis=-1)


if __name__ == "__main__":
    # Small shapes consistent with the module: discrete policy,
    # ob_dim=32, ac_dim=8, n_layers=2, layer_size=64, batch=8.
    B, ob_dim, ac_dim, layer_size = 8, 32, 8, 64

    key = jax.random.PRNGKey(0)
    k_obs, k_params = jax.random.split(key)

    obs = jax.random.normal(k_obs, (B, ob_dim), dtype=jnp.float32)
    params = init_mlp_params(k_params, ob_dim, ac_dim, layer_size)

    probs = pg_agent_forward(obs, params)
    probs = jax.block_until_ready(probs)

    ref = ref_forward(obs, params)
    assert probs.shape == (B, ac_dim)
    assert jnp.allclose(probs, ref, atol=1e-2), "mismatch vs reference"
    assert jnp.allclose(jnp.sum(probs, axis=-1), 1.0, atol=1e-2)

    # TODO(synk): the continuous branch (Normal(mean_net(obs), exp(logstd))) and the
    # numpy-side update()/advantage helpers are training-time glue, not the forward
    # hot path, and are not implemented as kernels.
    print("KERNEL_OK")
</pallas_src>

<mosaic_0001>
module attributes {stable_mosaic.version = 11 : i64} {
  func.func @mlp_policy_kernel(%arg0: i32, %arg1: memref<8x32xbf16, #tpu.memory_space<vmem>>, %arg2: memref<32x64xbf16, #tpu.memory_space<vmem>>, %arg3: memref<1x64xf32, #tpu.memory_space<vmem>>, %arg4: memref<64x64xbf16, #tpu.memory_space<vmem>>, %arg5: memref<1x64xf32, #tpu.memory_space<vmem>>, %arg6: memref<64x128xbf16, #tpu.memory_space<vmem>>, %arg7: memref<1x128xf32, #tpu.memory_space<vmem>>, %arg8: memref<8x128xf32, #tpu.memory_space<vmem>>) attributes {dimension_semantics = [#tpu.dimension_semantics<parallel>], iteration_bounds = array<i64: 1>, scalar_prefetch = 0 : i64, scratch_operands = 0 : i64, tpu.core_type = #tpu.core_type<tc>, window_params = [{transform_indices = @transform_0, window_bounds = array<i64: 8, 32>}, {pipeline_mode = #tpu.pipeline_mode<synchronous>, transform_indices = @transform_1, window_bounds = array<i64: 32, 64>}, {pipeline_mode = #tpu.pipeline_mode<synchronous>, transform_indices = @transform_2, window_bounds = array<i64: 1, 64>}, {pipeline_mode = #tpu.pipeline_mode<synchronous>, transform_indices = @transform_3, window_bounds = array<i64: 64, 64>}, {pipeline_mode = #tpu.pipeline_mode<synchronous>, transform_indices = @transform_4, window_bounds = array<i64: 1, 64>}, {pipeline_mode = #tpu.pipeline_mode<synchronous>, transform_indices = @transform_5, window_bounds = array<i64: 64, 128>}, {pipeline_mode = #tpu.pipeline_mode<synchronous>, transform_indices = @transform_6, window_bounds = array<i64: 1, 128>}, {transform_indices = @transform_7, window_bounds = array<i64: 8, 128>}]} {
    %c0 = arith.constant 0 : index
    %c0_0 = arith.constant 0 : index
    %0 = vector.load %arg1[%c0, %c0_0] : memref<8x32xbf16, #tpu.memory_space<vmem>>, vector<8x32xbf16>
    %c0_1 = arith.constant 0 : index
    %c0_2 = arith.constant 0 : index
    %1 = vector.load %arg2[%c0_1, %c0_2] : memref<32x64xbf16, #tpu.memory_space<vmem>>, vector<32x64xbf16>
    %cst = arith.constant dense<0.000000e+00> : vector<8x64xf32>
    %2 = tpu.matmul %0, %1, %cst {dimension_numbers = #tpu.dot_dimension_numbers<[1], [0], [0], [1], [0, 0, 1, 1], [], []>} : vector<8x32xbf16>, vector<32x64xbf16>, vector<8x64xf32> -> vector<8x64xf32>
    %c0_3 = arith.constant 0 : index
    %c0_4 = arith.constant 0 : index
    %3 = vector.load %arg3[%c0_3, %c0_4] : memref<1x64xf32, #tpu.memory_space<vmem>>, vector<1x64xf32>
    %4 = vector.broadcast %3 : vector<1x64xf32> to vector<8x64xf32>
    %5 = arith.addf %2, %4 : vector<8x64xf32>
    %6 = math.tanh %5 : vector<8x64xf32>
    %7 = arith.truncf %6 : vector<8x64xf32> to vector<8x64xbf16>
    %c0_5 = arith.constant 0 : index
    %c0_6 = arith.constant 0 : index
    %8 = vector.load %arg4[%c0_5, %c0_6] : memref<64x64xbf16, #tpu.memory_space<vmem>>, vector<64x64xbf16>
    %cst_7 = arith.constant dense<0.000000e+00> : vector<8x64xf32>
    %9 = tpu.matmul %7, %8, %cst_7 {dimension_numbers = #tpu.dot_dimension_numbers<[1], [0], [0], [1], [0, 0, 1, 1], [], []>} : vector<8x64xbf16>, vector<64x64xbf16>, vector<8x64xf32> -> vector<8x64xf32>
    %c0_8 = arith.constant 0 : index
    %c0_9 = arith.constant 0 : index
    %10 = vector.load %arg5[%c0_8, %c0_9] : memref<1x64xf32, #tpu.memory_space<vmem>>, vector<1x64xf32>
    %11 = vector.broadcast %10 : vector<1x64xf32> to vector<8x64xf32>
    %12 = arith.addf %9, %11 : vector<8x64xf32>
    %13 = math.tanh %12 : vector<8x64xf32>
    %14 = arith.truncf %13 : vector<8x64xf32> to vector<8x64xbf16>
    %c0_10 = arith.constant 0 : index
    %c0_11 = arith.constant 0 : index
    %15 = vector.load %arg6[%c0_10, %c0_11] : memref<64x128xbf16, #tpu.memory_space<vmem>>, vector<64x128xbf16>
    %cst_12 = arith.constant dense<0.000000e+00> : vector<8x128xf32>
    %16 = tpu.matmul %14, %15, %cst_12 {dimension_numbers = #tpu.dot_dimension_numbers<[1], [0], [0], [1], [0, 0, 1, 1], [], []>} : vector<8x64xbf16>, vector<64x128xbf16>, vector<8x128xf32> -> vector<8x128xf32>
    %c0_13 = arith.constant 0 : index
    %c0_14 = arith.constant 0 : index
    %17 = vector.load %arg7[%c0_13, %c0_14] : memref<1x128xf32, #tpu.memory_space<vmem>>, vector<1x128xf32>
    %18 = vector.broadcast %17 : vector<1x128xf32> to vector<8x128xf32>
    %19 = arith.addf %16, %18 : vector<8x128xf32>
    %cst_15 = arith.constant dense<0xFF800000> : vector<8xf32>
    %20 = vector.multi_reduction <maximumf>, %19, %cst_15 [1] : vector<8x128xf32> to vector<8xf32>
    %21 = vector.shape_cast %20 : vector<8xf32> to vector<8x1xf32>
    %22 = vector.broadcast %21 : vector<8x1xf32> to vector<8x128xf32>
    %23 = arith.subf %19, %22 : vector<8x128xf32>
    %24 = math.exp %23 : vector<8x128xf32>
    %cst_16 = arith.constant dense<0.000000e+00> : vector<8xf32>
    %25 = vector.multi_reduction <add>, %24, %cst_16 [1] : vector<8x128xf32> to vector<8xf32>
    %26 = vector.shape_cast %25 : vector<8xf32> to vector<8x1xf32>
    %27 = tpu.reciprocal %26 {approx = true} : vector<8x1xf32> -> vector<8x1xf32>
    %28 = vector.broadcast %27 : vector<8x1xf32> to vector<8x128xf32>
    %29 = arith.mulf %24, %28 : vector<8x128xf32>
    %c0_17 = arith.constant 0 : index
    %c0_18 = arith.constant 0 : index
    %30 = vector.load %arg8[%c0_17, %c0_18] : memref<8x128xf32, #tpu.memory_space<vmem>>, vector<8x128xf32>
    tpu.vector_store %arg8[%c0_17, %c0_18], %29 {strides = array<i32>} : memref<8x128xf32, #tpu.memory_space<vmem>>, vector<8x128xf32>,
    return
  }
  func.func @transform_0(%arg0: i32) -> (i32, i32) {
    %c0_i32 = arith.constant 0 : i32
    %c0_i32_0 = arith.constant 0 : i32
    return %arg0, %c0_i32 : i32, i32
  }
  func.func @transform_1(%arg0: i32) -> (i32, i32) {
    %c0_i32 = arith.constant 0 : i32
    %c0_i32_0 = arith.constant 0 : i32
    %c0_i32_1 = arith.constant 0 : i32
    return %c0_i32, %c0_i32_0 : i32, i32
  }
  func.func @transform_2(%arg0: i32) -> (i32, i32) {
    %c0_i32 = arith.constant 0 : i32
    %c0_i32_0 = arith.constant 0 : i32
    %c0_i32_1 = arith.constant 0 : i32
    return %c0_i32, %c0_i32_0 : i32, i32
  }
  func.func @transform_3(%arg0: i32) -> (i32, i32) {
    %c0_i32 = arith.constant 0 : i32
    %c0_i32_0 = arith.constant 0 : i32
    %c0_i32_1 = arith.constant 0 : i32
    return %c0_i32, %c0_i32_0 : i32, i32
  }
  func.func @transform_4(%arg0: i32) -> (i32, i32) {
    %c0_i32 = arith.constant 0 : i32
    %c0_i32_0 = arith.constant 0 : i32
    %c0_i32_1 = arith.constant 0 : i32
    return %c0_i32, %c0_i32_0 : i32, i32
  }
  func.func @transform_5(%arg0: i32) -> (i32, i32) {
    %c0_i32 = arith.constant 0 : i32
    %c0_i32_0 = arith.constant 0 : i32
    %c0_i32_1 = arith.constant 0 : i32
    return %c0_i32, %c0_i32_0 : i32, i32
  }
  func.func @transform_6(%arg0: i32) -> (i32, i32) {
    %c0_i32 = arith.constant 0 : i32
    %c0_i32_0 = arith.constant 0 : i32
    %c0_i32_1 = arith.constant 0 : i32
    return %c0_i32, %c0_i32_0 : i32, i32
  }
  func.func @transform_7(%arg0: i32) -> (i32, i32) {
    %c0_i32 = arith.constant 0 : i32
    %c0_i32_0 = arith.constant 0 : i32
    return %arg0, %c0_i32 : i32, i32
  }
}

</mosaic_0001>

<bundles_post_ra>
// kernel: tpu_custom_call.1
= control target key start
LH: loop header
LB: loop body
LE: loop exit
PB: predicated region body
PF: predicated region fallthrough
CT: control target
= control target key end

     0   :  { %12 = vsyncpa [#allocation3], 0  ;;  %s537_s0 = inlined_call_operand.hbm [shape: bf16[8,32], index: 0, kind: input, shape index: {}]   ;;  %s538_s1 = inlined_call_operand.hbm [shape: bf16[32,64], index: 1, kind: input, shape index: {}]   ;;  %s539_s2 = inlined_call_operand.vmem [shape: f32[1,64], index: 2, kind: input, shape index: {}]   ;;  %s540_s3 = inlined_call_operand.hbm [shape: bf16[64,64], index: 3, kind: input, shape index: {}]   ;;  %s541_s4 = inlined_call_operand.vmem [shape: f32[1,64], index: 4, kind: input, shape index: {}]   ;;  %s542_s5 = inlined_call_operand.hbm [shape: bf16[64,128], index: 5, kind: input, shape index: {}]   ;;  %s543_s6 = inlined_call_operand.vmem [shape: f32[1,128], index: 6, kind: input, shape index: {}]   ;;  %s544_s7 = inlined_call_operand.hbm [shape: f32[8,128], index: 7, kind: output, shape index: {}]  }
   0x1   :  { %13 = vsyncpa [#allocation6], 0 }
   0x2   :  { %14 = vsyncpa [#allocation9], 0  ;;  %s31_s26 = sshll.u32 %s538_s1, 4  ;;  %s32_s26 = int_to_ptr.hbm [resolvable:$true] %s31_s26 }
   0x3   :  { %15 = vsyncpa [#allocation4], 0  ;;  %s464_s27 = smov [#allocation5]   ;;  %s21_s8 = sshll.u32 %s537_s0, 4  ;;  %s22_s8 = int_to_ptr.hbm [resolvable:$true] %s21_s8 }
   0x4   :  { %s33_s28 = sshll.u32 %s464_s27, 4  ;;  %s465_s9 = smov 64   ;;  %s34_s28 = int_to_ptr.vmem [resolvable:$true] %s33_s28 }
   0x5   :  { %s466_s10 = smov 4   ;;  %s467_s11 = smov [#allocation2]  }
   0x6   :  { %39 = dma.hbm_to_vmem [thread:$0]  %s32_s26, 256, %s34_s28, [#allocation6], %s465_s9, %s465_s9, %s466_s10  }
   0x7   :  { %s23_s12 = sshll.u32 %s467_s11, 4  ;;  %s46_s15 = sshll.u32 %s540_s3, 4  ;;  %s24_s12 = int_to_ptr.vmem [resolvable:$true] %s23_s12  ;;  %s47_s15 = int_to_ptr.hbm [resolvable:$true] %s46_s15 }
   0x8   :  { %26 = dma.hbm_to_vmem [thread:$0]  %s22_s8, 64, %s24_s12, [#allocation3]  }
   0x9   :  { %s61_s17 = sshll.u32 %s542_s5, 4  ;;  %s468_s18 = smov [#allocation7]   ;;  %s62_s17 = int_to_ptr.hbm [resolvable:$true] %s61_s17 }
   0xa   :  { %s48_s19 = sshll.u32 %s468_s18, 4  ;;  %s469_s0 = smov [#allocation8]   ;;  %s49_s19 = int_to_ptr.vmem [resolvable:$true] %s48_s19 }
   0xb   :  { %54 = dma.hbm_to_vmem [thread:$0]  %s47_s15, 512, %s49_s19, [#allocation6], %s465_s9, %s465_s9, %s466_s10  }
   0xc   :  { %s63_s20 = sshll.u32 %s469_s0, 4  ;;  %s64_s20 = int_to_ptr.vmem [resolvable:$true] %s63_s20 }
   0xd   :  { %69 = dma.hbm_to_vmem [thread:$0]  %s62_s17, 512, %s64_s20, [#allocation9], %s465_s9, %s465_s9, %s466_s10  }
   0xe   :  { %456 = dma.done.wait [#allocation3], 64  }
   0xf   :  { %457 = vsyncadd [#allocation3], 4294967232 }
  0x10   :  { %458 = dma.done.wait [#allocation6], 768  }
  0x11   :  { %459 = vsyncadd [#allocation6], 4294966528 }
  0x12   :  { %460 = dma.done.wait [#allocation9], 512  }
  0x13   :  { %461 = vsyncadd [#allocation9], 4294966784  ;;  %v309_v0 = vld [vmem:[#allocation5 + $0x8] sm:$0xff]  ;;  %v308_v2 = vld [vmem:[#allocation5] sm:$0xff]  ;;  %vm110_vm0 = vcmask 261120   ;;  %vm165_vm1 = vcmask 523264  }
  0x14   :  { %v313_v1 = vld [vmem:[#allocation7 + $0x18] sm:$0xff]  ;;  %120 = vmatpush.bf16.msra.mxu0 %v309_v0  ;;  %v89_v3 = vld [vmem:[#allocation2] sm:$0xf]  ;;  %v312_v4 = vld [vmem:[#allocation7 + $0x10] sm:$0xff]  ;;  %s253_s27 = sshll.u32 %s544_s7, 4  ;;  %s254_s27 = int_to_ptr.hbm [resolvable:$true] %s253_s27 }
  0x15   :  { %173 = vmatpush.bf16.msra.mxu1 %v313_v1  ;;  %v311_v5 = vld [vmem:[#allocation7 + $0x8] sm:$0xff]  ;;  %v310_v6 = vld [vmem:[#allocation7] sm:$0xff]  ;;  %v317_v7 = vld [vmem:[#allocation8 + $0x18] sm:$0xff] }
  0x16   :  { %227 = vmatpush.bf16.msra.mxu2 %v317_v7  ;;  %v325_v8 = vld [vmem:[%s539_s2] ss:$0 sm:$0xff]  ;;  %v316_v14 = vld [vmem:[#allocation8 + $0x10] sm:$0xff]  ;;  %v314_v16 = vld [vmem:[#allocation8] sm:$0xff] }
  0x17   :  { %v315_v15 = vld [vmem:[#allocation8 + $0x8] sm:$0xff] }
  0x18   :  { %121 = vmatpush.bf16.msra.mxu0 %v308_v2  ;;  %v326_v17 = vld [vmem:[%s541_s4] ss:$0 sm:$0xff]  ;;  %s470_s4 = smov [#allocation10]  }
  0x19   :  { %174 = vmatpush.bf16.msra.mxu1 %v312_v4  ;;  %v327_v23 = vld [vmem:[%s543_s6] ss:$0 sm:$0xff]  ;;  %s251_s24 = sshll.u32 %s470_s4, 4  ;;  %s252_s24 = int_to_ptr.vmem [resolvable:$true] %s251_s24 }
  0x1a   :  { %228 = vmatpush.bf16.msra.mxu2 %v316_v14 }
  0x1b   :  { %273 = vmatmul.msk.bf16.vlgmr.msra.gmra.mxu0 %vm110_vm0, %v89_v3 }
  0x1d   :  { %175 = vmatpush.bf16.msra.mxu1 %v311_v5 }
  0x1e   :  { %229 = vmatpush.bf16.msra.mxu2 %v315_v15 }
  0x21   :  { %176 = vmatpush.bf16.msra.mxu1 %v310_v6 }
  0x22   :  { %230 = vmatpush.bf16.msra.mxu2 %v314_v16 }
  0x98   :  { %v123_v9 = vpop.f32.mrf.mxu0 }
  0x99   :  { %v124_v10 = vadd.f32 %v325_v8, %v123_v9 }
  0x9b   :  { %328 = vtanh.f32 %v124_v10 }
  0xa0   :  { %v125_v11 = vpop.f32.mrf.mxu0 }
  0xa1   :  { %v329_v12 = vpop.eup %328 }
  0xa2   :  { %v128_v13 = vpack.c.bf16 %v329_v12, %v329_v12 }
  0xa4   :  { %290 = vmatmul.msk.bf16.vlgmr.msra.gmra.mxu1 %vm165_vm1, %v128_v13 }
 0x121   :  { %v178_v18 = vpop.f32.mrf.mxu1 }
 0x122   :  { %v179_v19 = vadd.f32 %v326_v17, %v178_v18 }
 0x124   :  { %330 = vtanh.f32 %v179_v19 }
 0x129   :  { %v180_v20 = vpop.f32.mrf.mxu1 }
 0x12a   :  { %v331_v21 = vpop.eup %330 }
 0x12b   :  { %v183_v22 = vpack.c.bf16 %v331_v21, %v331_v21 }
 0x12d   :  { %307 = vmatmul.msk.bf16.vlgmr.msra.gmra.mxu2 %vm165_vm1, %v183_v22 }
 0x1b0   :  { %v232_v24 = vpop.f32.mrf.mxu2 }
 0x1b1   :  { %v233_v25 = vadd.f32 %v327_v23, %v232_v24 }
 0x1b3   :  { %236 = vmax.xlane.f32.xlu0 %v233_v25 }
 0x1b8   :  { %v234_v26 = vpop.f32.mrf.mxu2 }
 0x226   :  { %v237_v27 = vpop.xlane.xlu0 %236 }
 0x227   :  { %v238_v28 = vsub.f32 %v233_v25, %v237_v27 }
 0x229   :  { %v239_v29 = vmul.f32 1.442695, %v238_v28 }
 0x22b   :  { %332 = vpow2.f32 %v239_v29 }
 0x231   :  { %v333_v30 = vpop.eup %332 }
 0x232   :  { %241 = vadd.xlane.f32.xlu0 %v333_v30 }
 0x2a5   :  { %v242_v31 = vpop.xlane.xlu0 %241 }
 0x2a6   :  { %334 = vrcp.f32 %v242_v31 }
 0x2ac   :  { %v335_v32 = vpop.eup %334 }
 0x2ad   :  { %v244_v33 = vmul.f32 %v335_v32, %v333_v30 }
 0x2af   :  { %245 = vst [vmem:[#allocation10] sm:$0xff] %v244_v33 }
 0x2b0   :  { %256 = dma.vmem_to_hbm [thread:$0]  %s252_s24, 128, %s254_s27, [#allocation4]  }
 0x2b1   :  { %462 = dma.done.wait [#allocation4], 128  }
 0x2b2   :  { %463 = vsyncadd [#allocation4], 4294967168 }
 0x2b3   :  { %261 = vsyncpa [#allocation3], 1 }
 0x2b4   :  { %262 = vsyncpa [#allocation6], 1 }
 0x2b5   :  { %263 = vsyncpa [#allocation9], 1 }
 0x2b6   :  { %264 = vsyncpa [#allocation4], 1 }

</bundles_post_ra>
